<compile_context>
chip_gen: v5e
topology: v5e:2x2
jax: 0.10.0
libtpu: 0.0.40
codegen_flags: <defaults>
</compile_context>

<pallas_src>
import math

import jax
import jax.numpy as jnp
from jax import lax
from jax.experimental import pallas as pl
from jax.experimental.pallas import tpu as pltpu


def _cdiv(a, b):
    return -(-a // b)


def _round_up(a, b):
    return _cdiv(a, b) * b


def _vmem_limit(est_bytes):
    # Generous but bounded: floor at the smallest default (16 MiB, v5e), cap at
    # 48 MiB so the request is safe even on v7x's 64 MiB/TC VMEM.
    return int(min(max(int(est_bytes * 1.5), 16 * 2**20), 48 * 2**20))


def _segment_select(seg_ids, seg_tbl, out_shape):
    """(TS,1) int ids x (NS,D) table -> (TS,D) f32 via unrolled VPU select (no MXU)."""
    seg_emb = jnp.zeros(out_shape, jnp.float32)
    for n in range(seg_tbl.shape[0]):
        seg_emb = seg_emb + jnp.where(seg_ids == n, 1.0, 0.0) * seg_tbl[n:n + 1, :]
    return seg_emb


# ---------------------------------------------------------------------------
# Path 1: small vocab — VMEM-resident table, one-hot MXU matmul per row tile.
# ---------------------------------------------------------------------------
def _onehot_kernel(tok_ref, seg_ref, tbl_ref, seg_tbl_ref, pe_ref, out_ref):
    # tok_ref/seg_ref: (TS, 1) int32; tbl_ref: (Vp, D) f32 (Vp multiple of 128)
    # seg_tbl_ref: (NS, D) f32; pe_ref/out_ref: (TS, D) f32
    TS = out_ref.shape[0]
    Vp = tbl_ref.shape[0]

    tok = tok_ref[...]                                        # (TS, 1)
    col = lax.broadcasted_iota(jnp.int32, (TS, Vp), 1)
    one_hot = (col == tok).astype(tbl_ref.dtype)              # full-width lanes
    tok_emb = jnp.dot(one_hot, tbl_ref[...],
                      preferred_element_type=jnp.float32)

    seg_emb = _segment_select(seg_ref[...], seg_tbl_ref[...], out_ref.shape)
    out_ref[...] = (tok_emb + pe_ref[...] + seg_emb).astype(out_ref.dtype)


def _embedding_onehot(tok_ids, seg_ids, tok_table, seg_table, pe):
    B, S = tok_ids.shape
    V, D = tok_table.shape
    NS = seg_table.shape[0]

    TS = 512 if S >= 512 else _round_up(S, 8)     # row tile (multiple of 8, up to 512)
    n_s = _cdiv(S, TS)
    S_pad = n_s * TS

    Vp = _round_up(V, 128)                        # MXU-K / lane friendly contraction
    tbl = jnp.zeros((Vp, D), jnp.float32).at[:V].set(tok_table.astype(jnp.float32))
    seg_tbl = seg_table.astype(jnp.float32)

    tok_col = jnp.zeros((B, S_pad, 1), jnp.int32).at[:, :S, 0].set(tok_ids)
    seg_col = jnp.zeros((B, S_pad, 1), jnp.int32).at[:, :S, 0].set(seg_ids)
    pe_pad = jnp.zeros((S_pad, D), jnp.float32).at[:S].set(pe)

    est = (2 * Vp * D * 4            # resident table (double-buffered by pipeline)
           + 2 * 2 * TS * D * 4      # pe + out tiles (double-buffered)
           + 2 * TS * Vp * 4         # one-hot intermediate + headroom
           + 2 * NS * D * 4
           + 4 * 2 * TS * 4)

    out = pl.pallas_call(
        _onehot_kernel,
        out_shape=jax.ShapeDtypeStruct((B, S_pad, D), jnp.float32),
        grid=(B, n_s),
        in_specs=[
            pl.BlockSpec((None, TS, 1), lambda b, s: (b, s, 0)),   # token ids
            pl.BlockSpec((None, TS, 1), lambda b, s: (b, s, 0)),   # segment ids
            pl.BlockSpec((Vp, D), lambda b, s: (0, 0)),            # padded token table
            pl.BlockSpec((NS, D), lambda b, s: (0, 0)),            # segment table
            pl.BlockSpec((TS, D), lambda b, s: (s, 0)),            # PE rows (batch-free)
        ],
        out_specs=pl.BlockSpec((None, TS, D), lambda b, s: (b, s, 0)),
        compiler_params=pltpu.CompilerParams(
            dimension_semantics=("parallel", "parallel"),
            vmem_limit_bytes=_vmem_limit(est),
        ),
    )(tok_col, seg_col, tbl, seg_tbl, pe_pad)
    return out[:, :S, :]


# ---------------------------------------------------------------------------
# Path 2: large vocab — table stays in HBM (native dtype), per-row DMA gather
#          straight into the pipelined output tile, VPU segment add.
# ---------------------------------------------------------------------------
def _gather_body(tok_ids_sref, seg_ref, seg_tbl_ref, pe_ref, tok_hbm_ref,
                 out_ref, row_buf, sem):
    TS, D = out_ref.shape
    n_s = pl.num_programs(1)
    base = (pl.program_id(0) * n_s + pl.program_id(1)) * TS
    dst = out_ref if row_buf is None else row_buf

    # Issue one row DMA per token in this tile; all TS copies target the same DMA
    # semaphore and stay in flight concurrently.
    def _issue(i, carry):
        tid = tok_ids_sref[base + i]
        pltpu.make_async_copy(tok_hbm_ref.at[pl.ds(tid, 1)],
                              dst.at[pl.ds(i, 1)], sem).start()
        return carry
    lax.fori_loop(0, TS, _issue, 0, unroll=8)

    # VPU segment select + PE load overlap the in-flight row gathers.
    add = _segment_select(seg_ref[...], seg_tbl_ref[...], (TS, D)) + pe_ref[...]

    # Wait for all TS row copies.  Descriptors are rebuilt with the SAME src/dst
    # slices as the starts (ids re-read from SMEM), so sizes match exactly.
    def _wait(i, carry):
        tid = tok_ids_sref[base + i]
        pltpu.make_async_copy(tok_hbm_ref.at[pl.ds(tid, 1)],
                              dst.at[pl.ds(i, 1)], sem).wait()
        return carry
    lax.fori_loop(0, TS, _wait, 0, unroll=8)

    if row_buf is None:
        out_ref[...] = out_ref[...] + add                      # rows already in out_ref
    else:
        out_ref[...] = row_buf[...].astype(jnp.float32) + add  # native dtype -> f32


def _gather_kernel_direct(tok_ids_sref, seg_ref, seg_tbl_ref, pe_ref, tok_hbm_ref,
                          out_ref, sem):
    _gather_body(tok_ids_sref, seg_ref, seg_tbl_ref, pe_ref, tok_hbm_ref,
                 out_ref, None, sem)


def _gather_kernel_cast(tok_ids_sref, seg_ref, seg_tbl_ref, pe_ref, tok_hbm_ref,
                        out_ref, row_buf, sem):
    _gather_body(tok_ids_sref, seg_ref, seg_tbl_ref, pe_ref, tok_hbm_ref,
                 out_ref, row_buf, sem)


def _embedding_gather(tok_ids, seg_ids, tok_table, seg_table, pe):
    B, S = tok_ids.shape
    V, D = tok_table.shape
    NS = seg_table.shape[0]

    TS = 256 if S >= 256 else _round_up(S, 8)     # big row tiles: amortize grid-step
    n_s = _cdiv(S, TS)                            # overhead, many DMAs in flight
    S_pad = n_s * TS

    # Padded rows gather row 0 (wasted but harmless) and are sliced off below.
    tok_flat = (jnp.zeros((B, S_pad), jnp.int32).at[:, :S].set(tok_ids)).reshape(-1)
    seg_col = jnp.zeros((B, S_pad, 1), jnp.int32).at[:, :S, 0].set(seg_ids)
    pe_pad = jnp.zeros((S_pad, D), jnp.float32).at[:S].set(pe)
    seg_tbl = seg_table.astype(jnp.float32)

    direct = tok_table.dtype == jnp.float32       # DMA rows straight into out_ref
    if direct:
        kernel = _gather_kernel_direct
        scratch = [pltpu.SemaphoreType.DMA]
    else:
        kernel = _gather_kernel_cast
        scratch = [pltpu.VMEM((TS, D), tok_table.dtype), pltpu.SemaphoreType.DMA]

    grid_spec = pltpu.PrefetchScalarGridSpec(
        num_scalar_prefetch=1,                    # token ids -> SMEM before the grid
        grid=(B, n_s),
        in_specs=[
            pl.BlockSpec((None, TS, 1), lambda b, s, ids: (b, s, 0)),  # segment ids
            pl.BlockSpec((NS, D), lambda b, s, ids: (0, 0)),           # segment table
            pl.BlockSpec((TS, D), lambda b, s, ids: (s, 0)),           # PE (batch-free)
            pl.BlockSpec(memory_space=pl.ANY),                         # token table, HBM
        ],
        out_specs=pl.BlockSpec((None, TS, D), lambda b, s, ids: (b, s, 0)),
        scratch_shapes=scratch,
    )

    est = (2 * 2 * TS * D * 4 + 2 * NS * D * 4 + 2 * 2 * TS * 4
           + (0 if direct else TS * D * tok_table.dtype.itemsize))

    out = pl.pallas_call(
        kernel,
        grid_spec=grid_spec,
        out_shape=jax.ShapeDtypeStruct((B, S_pad, D), jnp.float32),
        compiler_params=pltpu.CompilerParams(
            dimension_semantics=("parallel", "parallel"),   # shard across v7x's 2 TCs
            vmem_limit_bytes=_vmem_limit(est),
        ),
    )(tok_flat, seg_col, seg_tbl, pe_pad, tok_table)
    return out[:, :S, :]


# ---------------------------------------------------------------------------
# Public wrapper — mirrors bert_input_Embedding.forward (sinusoidal PE, eval mode).
# ---------------------------------------------------------------------------
def bert_input_embedding(tok_idx, segment_label, tok_table, seg_table, pe_full,
                         gather_from_hbm=None):
    """tok_idx, segment_label: (B, S) int. Returns (B, S, D) float32."""
    B, S = tok_idx.shape
    V, D = tok_table.shape

    tok_ids = tok_idx.astype(jnp.int32)
    seg_ids = segment_label.astype(jnp.int32)
    pe = pe_full[:S].astype(jnp.float32)          # self.pe[:, :seq_len]; also works for
                                                  # a 'learned' positional table.

    if gather_from_hbm is None:
        table_bytes = V * D * jnp.dtype(tok_table.dtype).itemsize
        # One-hot MXU cost grows ~linearly in V; row-gather traffic is V-independent,
        # so switch early.  TODO(synk): make this crossover generation-aware via
        # pltpu.get_tpu_info (lower on v5e's MXU, lower still on v7x's fast HBM).
        gather_from_hbm = (V > 2048) or (table_bytes > (2 << 20))

    if gather_from_hbm:
        out = _embedding_gather(tok_ids, seg_ids, tok_table, seg_table, pe)
    else:
        out = _embedding_onehot(tok_ids, seg_ids, tok_table, seg_table, pe)
    return out                                    # dropout: eval semantics (identity)


def make_sinusoidal_pe(context_len, d_model):
    position = jnp.arange(context_len, dtype=jnp.float32)[:, None]
    div_term = jnp.exp(jnp.arange(0, d_model, 2, dtype=jnp.float32)
                       * -(math.log(10000.0) / d_model))
    pe = jnp.zeros((context_len, d_model), jnp.float32)
    pe = pe.at[:, 0::2].set(jnp.sin(position * div_term))
    pe = pe.at[:, 1::2].set(jnp.cos(position * div_term))
    return pe


if __name__ == "__main__":
    # config (toy shapes consistent with the module)
    vocab_size = 64
    embed_dim = 32
    context_length = 16
    num_segment = 2
    batch, seq_len = 2, 8

    key = jax.random.PRNGKey(0)
    k_tok_tbl, k_seg_tbl, k_tok, k_seg = jax.random.split(key, 4)

    token_table = jax.random.normal(k_tok_tbl, (vocab_size, embed_dim), jnp.float32)
    seg_table = jax.random.normal(k_seg_tbl, (num_segment, embed_dim), jnp.float32)
    pe_full = make_sinusoidal_pe(context_length, embed_dim)

    tok_idx = jax.random.randint(k_tok, (batch, seq_len), 0, vocab_size, jnp.int32)
    segment_label = jax.random.randint(k_seg, (batch, seq_len), 0, num_segment,
                                       jnp.int32)

    # Pure-JAX reference.
    ref = (jnp.take(token_table, tok_idx, axis=0)
           + pe_full[:seq_len][None, :, :]
           + jnp.take(seg_table, segment_label, axis=0))

    # Small-vocab one-hot MXU path (default selection for these shapes).
    out_onehot = jax.block_until_ready(
        bert_input_embedding(tok_idx, segment_label, token_table, seg_table, pe_full,
                             gather_from_hbm=False))
    # HBM DMA-gather path (the scalable design), forced on for verification.
    out_gather = jax.block_until_ready(
        bert_input_embedding(tok_idx, segment_label, token_table, seg_table, pe_full,
                             gather_from_hbm=True))

    assert out_onehot.shape == (batch, seq_len, embed_dim)
    assert out_gather.shape == (batch, seq_len, embed_dim)
    assert jnp.allclose(out_onehot, ref, atol=1e-5, rtol=1e-5)
    assert jnp.allclose(out_gather, ref, atol=1e-5, rtol=1e-5)

    # Odd seq_len exercises row padding / slice-off in the gather path.
    s2 = 5
    tok2 = tok_idx[:, :s2]
    seg2 = segment_label[:, :s2]
    ref2 = (jnp.take(token_table, tok2, axis=0)
            + pe_full[:s2][None, :, :]
            + jnp.take(seg_table, seg2, axis=0))
    out2 = jax.block_until_ready(
        bert_input_embedding(tok2, seg2, token_table, seg_table, pe_full,
                             gather_from_hbm=True))
    assert jnp.allclose(out2, ref2, atol=1e-5, rtol=1e-5)

    print("KERNEL_OK")
</pallas_src>

<mosaic_0001>
module attributes {stable_mosaic.version = 11 : i64} {
  func.func @_onehot_kernel(%arg0: i32, %arg1: i32, %arg2: memref<1x8x1xi32, #tpu.memory_space<vmem>>, %arg3: memref<1x8x1xi32, #tpu.memory_space<vmem>>, %arg4: memref<128x32xf32, #tpu.memory_space<vmem>>, %arg5: memref<2x32xf32, #tpu.memory_space<vmem>>, %arg6: memref<8x32xf32, #tpu.memory_space<vmem>>, %arg7: memref<1x8x32xf32, #tpu.memory_space<vmem>>) attributes {dimension_semantics = [#tpu.dimension_semantics<parallel>, #tpu.dimension_semantics<parallel>], iteration_bounds = array<i64: 2, 1>, scalar_prefetch = 0 : i64, scratch_operands = 0 : i64, tpu.core_type = #tpu.core_type<tc>, window_params = [{transform_indices = @transform_0, window_bounds = array<i64: 1, 8, 1>}, {transform_indices = @transform_1, window_bounds = array<i64: 1, 8, 1>}, {pipeline_mode = #tpu.pipeline_mode<synchronous>, transform_indices = @transform_2, window_bounds = array<i64: 128, 32>}, {pipeline_mode = #tpu.pipeline_mode<synchronous>, transform_indices = @transform_3, window_bounds = array<i64: 2, 32>}, {transform_indices = @transform_4, window_bounds = array<i64: 8, 32>}, {transform_indices = @transform_5, window_bounds = array<i64: 1, 8, 32>}]} {
    %c0 = arith.constant 0 : index
    %c0_0 = arith.constant 0 : index
    %c0_1 = arith.constant 0 : index
    %0 = vector.load %arg2[%c0, %c0_0, %c0_1] : memref<1x8x1xi32, #tpu.memory_space<vmem>>, vector<1x8x1xi32>
    %1 = vector.shape_cast %0 : vector<1x8x1xi32> to vector<8x1xi32>
    %2 = tpu.iota {dimensions = array<i32: 1>} : vector<8x128xi32>
    %3 = vector.broadcast %1 : vector<8x1xi32> to vector<8x128xi32>
    %4 = arith.cmpi eq, %2, %3 : vector<8x128xi32>
    %5 = arith.extui %4 : vector<8x128xi1> to vector<8x128xi32>
    %6 = arith.sitofp %5 : vector<8x128xi32> to vector<8x128xf32>
    %c0_2 = arith.constant 0 : index
    %c0_3 = arith.constant 0 : index
    %7 = vector.load %arg4[%c0_2, %c0_3] : memref<128x32xf32, #tpu.memory_space<vmem>>, vector<128x32xf32>
    %cst = arith.constant dense<0.000000e+00> : vector<8x32xf32>
    %8 = tpu.matmul %6, %7, %cst {dimension_numbers = #tpu.dot_dimension_numbers<[1], [0], [0], [1], [0, 0, 1, 1], [], []>} : vector<8x128xf32>, vector<128x32xf32>, vector<8x32xf32> -> vector<8x32xf32>
    %c0_4 = arith.constant 0 : index
    %c0_5 = arith.constant 0 : index
    %c0_6 = arith.constant 0 : index
    %9 = vector.load %arg3[%c0_4, %c0_5, %c0_6] : memref<1x8x1xi32, #tpu.memory_space<vmem>>, vector<1x8x1xi32>
    %10 = vector.shape_cast %9 : vector<1x8x1xi32> to vector<8x1xi32>
    %c0_7 = arith.constant 0 : index
    %c0_8 = arith.constant 0 : index
    %11 = vector.load %arg5[%c0_7, %c0_8] : memref<2x32xf32, #tpu.memory_space<vmem>>, vector<2x32xf32>
    %cst_9 = arith.constant 0.000000e+00 : f32
    %12 = vector.broadcast %cst_9 : f32 to vector<8x32xf32>
    %c0_i32 = arith.constant 0 : i32
    %13 = vector.broadcast %c0_i32 : i32 to vector<8x1xi32>
    %14 = arith.cmpi eq, %10, %13 : vector<8x1xi32>
    %cst_10 = arith.constant 1.000000e+00 : f32
    %cst_11 = arith.constant 0.000000e+00 : f32
    %15 = vector.broadcast %cst_10 : f32 to vector<8x1xf32>
    %16 = vector.broadcast %cst_11 : f32 to vector<8x1xf32>
    %17 = arith.select %14, %15, %16 : vector<8x1xi1>, vector<8x1xf32>
    %18 = vector.extract_strided_slice %11 {offsets = [0, 0], sizes = [1, 32], strides = [1, 1]} : vector<2x32xf32> to vector<1x32xf32>
    %19 = vector.broadcast %17 : vector<8x1xf32> to vector<8x32xf32>
    %20 = vector.broadcast %18 : vector<1x32xf32> to vector<8x32xf32>
    %21 = arith.mulf %19, %20 : vector<8x32xf32>
    %22 = arith.addf %12, %21 : vector<8x32xf32>
    %c1_i32 = arith.constant 1 : i32
    %23 = vector.broadcast %c1_i32 : i32 to vector<8x1xi32>
    %24 = arith.cmpi eq, %10, %23 : vector<8x1xi32>
    %cst_12 = arith.constant 1.000000e+00 : f32
    %cst_13 = arith.constant 0.000000e+00 : f32
    %25 = vector.broadcast %cst_12 : f32 to vector<8x1xf32>
    %26 = vector.broadcast %cst_13 : f32 to vector<8x1xf32>
    %27 = arith.select %24, %25, %26 : vector<8x1xi1>, vector<8x1xf32>
    %28 = vector.extract_strided_slice %11 {offsets = [1, 0], sizes = [1, 32], strides = [1, 1]} : vector<2x32xf32> to vector<1x32xf32>
    %29 = vector.broadcast %27 : vector<8x1xf32> to vector<8x32xf32>
    %30 = vector.broadcast %28 : vector<1x32xf32> to vector<8x32xf32>
    %31 = arith.mulf %29, %30 : vector<8x32xf32>
    %32 = arith.addf %22, %31 : vector<8x32xf32>
    %c0_14 = arith.constant 0 : index
    %c0_15 = arith.constant 0 : index
    %33 = vector.load %arg6[%c0_14, %c0_15] : memref<8x32xf32, #tpu.memory_space<vmem>>, vector<8x32xf32>
    %34 = arith.addf %8, %33 : vector<8x32xf32>
    %35 = arith.addf %34, %32 : vector<8x32xf32>
    %c0_16 = arith.constant 0 : index
    %c0_17 = arith.constant 0 : index
    %c0_18 = arith.constant 0 : index
    %36 = vector.load %arg7[%c0_16, %c0_17, %c0_18] : memref<1x8x32xf32, #tpu.memory_space<vmem>>, vector<1x8x32xf32>
    %37 = vector.shape_cast %36 : vector<1x8x32xf32> to vector<8x32xf32>
    %38 = vector.shape_cast %35 : vector<8x32xf32> to vector<1x8x32xf32>
    tpu.vector_store %arg7[%c0_16, %c0_17, %c0_18], %38 {strides = array<i32>} : memref<1x8x32xf32, #tpu.memory_space<vmem>>, vector<1x8x32xf32>,
    return
  }
  func.func @transform_0(%arg0: i32, %arg1: i32) -> (i32, i32, i32) {
    %c0_i32 = arith.constant 0 : i32
    %c0_i32_0 = arith.constant 0 : i32
    return %arg0, %arg1, %c0_i32 : i32, i32, i32
  }
  func.func @transform_1(%arg0: i32, %arg1: i32) -> (i32, i32, i32) {
    %c0_i32 = arith.constant 0 : i32
    %c0_i32_0 = arith.constant 0 : i32
    return %arg0, %arg1, %c0_i32 : i32, i32, i32
  }
  func.func @transform_2(%arg0: i32, %arg1: i32) -> (i32, i32) {
    %c0_i32 = arith.constant 0 : i32
    %c0_i32_0 = arith.constant 0 : i32
    %c0_i32_1 = arith.constant 0 : i32
    return %c0_i32, %c0_i32_0 : i32, i32
  }
  func.func @transform_3(%arg0: i32, %arg1: i32) -> (i32, i32) {
    %c0_i32 = arith.constant 0 : i32
    %c0_i32_0 = arith.constant 0 : i32
    %c0_i32_1 = arith.constant 0 : i32
    return %c0_i32, %c0_i32_0 : i32, i32
  }
  func.func @transform_4(%arg0: i32, %arg1: i32) -> (i32, i32) {
    %c0_i32 = arith.constant 0 : i32
    %c0_i32_0 = arith.constant 0 : i32
    return %arg1, %c0_i32 : i32, i32
  }
  func.func @transform_5(%arg0: i32, %arg1: i32) -> (i32, i32, i32) {
    %c0_i32 = arith.constant 0 : i32
    %c0_i32_0 = arith.constant 0 : i32
    return %arg0, %arg1, %c0_i32 : i32, i32, i32
  }
}

</mosaic_0001>

<bundles_post_ra>
// kernel: tpu_custom_call.1
= control target key start
LH: loop header
LB: loop body
LE: loop exit
PB: predicated region body
PF: predicated region fallthrough
CT: control target
= control target key end

     0   :  { %10 = vsyncpa [#allocation3], 0  ;;  %s825_s0 = inlined_call_operand.vmem [shape: s32[2,8,1], index: 0, kind: input, shape index: {}]   ;;  %s826_s1 = inlined_call_operand.vmem [shape: s32[2,8,1], index: 1, kind: input, shape index: {}]   ;;  %s827_s2 = inlined_call_operand.vmem [shape: f32[128,32], index: 2, kind: input, shape index: {}]   ;;  %s828_s3 = inlined_call_operand.vmem [shape: f32[2,32], index: 3, kind: input, shape index: {}]   ;;  %s829_s4 = inlined_call_operand.vmem [shape: f32[8,32], index: 4, kind: input, shape index: {}]   ;;  %s830_s5 = inlined_call_operand.hbm [shape: f32[2,8,32], index: 5, kind: output, shape index: {}]  }
   0x1   :  { %12 = vsyncpa [#allocation3 + $0x1], 0  ;;  %s671_s18 = smov 0   ;;  %s673_s19 = smov 0  }
   0x2   :  { %s675_s20 = smov 0   ;;  %s677_s21 = smov 0  }
   0x3   :  { %s679_s22 = smov 0   ;;  %s681_s23 = smov 0  }
   0x4 LB: > { %s479_s24 = sadd.s32 4294967295, %s636_s23   ;;  %s480_s25 = sadd.s32 4294967294, %s636_s23   ;;  %s636_s23 = sphi %s681_s23, %s18_s23   ;;  %s632_s22 = sphi %s679_s22, %s837_s22   ;;  %s628_s21 = sphi %s677_s21, %s836_s21   ;;  %s624_s20 = sphi %s675_s20, %s835_s20   ;;  %s620_s19 = sphi %s673_s19, %s834_s19   ;;  %s616_s18 = sphi %s671_s18, %s833_s18  }
   0x5   : > { %s30_s26 = sadd.s32 1, %s632_s22  ;;  %s163_s27 = sadd.s32 1, %s624_s20 }
   0x6   : > { %p32_p0 = scmp.ge.s32.totalorder %s30_s26, 2  ;;  %p173_p1 = scmp.ne.s32.totalorder %s624_s20, %s620_s19 }
   0x7   : > { %p174_p2 = scmp.eq.s32.totalorder %s479_s24, 1  ;;  %p179_p3 = scmp.ne.s32.totalorder %s620_s19, %s616_s18 }
   0x8   : > { %s839_s26 = smov (%p32_p0, %s30_s26), 0  ;;  %p180_p5 = scmp.eq.s32.totalorder %s480_s25, 1 }
   0x9   : > { %p711_p4 = por %p174_p2, %p173_p1  ;;  %s158_s29 = ssub.s32 %s632_s22, %s839_s26 }
   0xa   : > { %p484_p6 = scmp.ge.s32.totalorder %s636_s23, 1  ;;  %p161_p7 = scmp.eq.s32.totalorder %s158_s29, 0 }
   0xb   : > { %p718_p8 = por %p180_p5, %p179_p3  ;;  %p231_p9 = scmp.lt.s32.totalorder %s636_s23, 3 }
   0xc   : > { %s724_s6 = scalar_select %p161_p7, %s624_s20, %s163_s27  }
   0xd   : > { %p232_p10 = pnand %p484_p6, %p231_p9 }
   0xe   : > { %p272_p11 = scmp.lt.s32.totalorder (!%p232_p10), %s628_s21, 1  ;;  %s491_s29 = sshll.u32 (!%p232_p10), %s628_s21, 3 }
   0xf   : > { %235 = sbr.rel (%p232_p10) target bundleno = 274 (0x112), region = 40  ;;  %s373_s9 = scalar_lea.hbm (!%p232_p10), %s830_s5, %s491_s29 }
  0x14   : > { %v314_v0 = vld [vmem:[%s827_s2 + $0x78] sm:$0xff]  ;;  %v313_v1 = vld [vmem:[%s827_s2 + $0x70] sm:$0xff]  ;;  %v638_v2 = vmov 0   ;;  %s273_s11 = scalar_select %p272_p11, %s628_s21, 1  ;;  %v312_v3 = vld [vmem:[%s827_s2 + $0x68] sm:$0xff]  ;;  %v639_v8 = vmov 0.0   ;;  %v291_v23 = vlaneseq }
  0x15   : > { %552 = vset.pattern.permute.xlu0 %v638_v2  ;;  %338 = vmatpush.msra.mxu0 %v314_v0  ;;  %v311_v4 = vld [vmem:[%s827_s2 + $0x60] sm:$0xff]  ;;  %v310_v7 = vld [vmem:[%s827_s2 + $0x58] sm:$0xff]  ;;  %v309_v11 = vld [vmem:[%s827_s2 + $0x50] sm:$0xff]  ;;  %v640_v26 = vmov 1.0   ;;  %vm359_vm3 = vcmask 261120  }
  0x16   : > { %s486_s14 = sshll.u32 %s273_s11, 3  ;;  %v308_v12 = vld [vmem:[%s827_s2 + $0x48] sm:$0xff]  ;;  %v307_v14 = vld [vmem:[%s827_s2 + $0x40] sm:$0xff]  ;;  %v306_v15 = vld [vmem:[%s827_s2 + $0x38] sm:$0xff]  ;;  %v292_v24 = vand.u32 127, %v291_v23 }
  0x17   : > { %339 = vmatpush.msra.mxu0 %v313_v1  ;;  %s278_s25 = scalar_lea.vmem %s825_s0, %s486_s14  ;;  %s285_s7 = scalar_lea.vmem %s826_s1, %s486_s14  ;;  %v305_v16 = vld [vmem:[%s827_s2 + $0x30] sm:$0xff]  ;;  %v304_v17 = vld [vmem:[%s827_s2 + $0x28] sm:$0xff]  ;;  %v303_v18 = vld [vmem:[%s827_s2 + $0x20] sm:$0xff] }
  0x18   : > { %v290_v5 = vld [vmem:[%s278_s25] sm:$0xff]  ;;  %v302_v19 = vld [vmem:[%s827_s2 + $0x18] sm:$0xff]  ;;  %v301_v20 = vld [vmem:[%s827_s2 + $0x10] sm:$0xff]  ;;  %s269_s25 = sand.u32 1, %s620_s19   ;;  %s377_s14 = sshll.u32 %s373_s9, 4  ;;  %s378_s14 = int_to_ptr.hbm [resolvable:$true] %s377_s14 }
  0x19   : > { %340 = vmatpush.msra.mxu0 %v312_v3  ;;  %v315_v6 = vld [vmem:[%s285_s7] sm:$0xff]  ;;  %294 = vperm.xlu0 %552, %v290_v5   ;;  %v300_v21 = vld [vmem:[%s827_s2 + $0x8] sm:$0xff]  ;;  %s485_s27 = sshll.u32 %s269_s25, 3  ;;  %s362_s21 = scalar_lea.sflag [#allocation3], %s269_s25 }
  0x1a   : > { %vm317_vm0 = vcmp.eq.s32.totalorder %v315_v6, 0  ;;  %vm327_vm1 = vcmp.eq.s32.totalorder %v315_v6, 1  ;;  %v299_v22 = vld [vmem:[%s827_s2] sm:$0xff]  ;;  %s271_s12 = scalar_lea.vmem [#allocation2], %s485_s27  ;;  %s572_s15 = sshra.s32 %s378_s14, 4  ;;  %s573_s15 = int_to_ptr.hbm [resolvable:$true] %s572_s15 }
  0x1b   : > { %341 = vmatpush.msra.mxu0 %v311_v4  ;;  %v318_v9 = vsel %vm317_vm0, 1.0, %v639_v8  ;;  %v328_v10 = vsel %vm327_vm1, 1.0, %v639_v8  ;;  %v316_v27 = vld [vmem:[%s828_s3] sm:$0x3]  ;;  %s375_s13 = sshll.u32 %s271_s12, 4  ;;  %s574_s16 = scalar_lea.hbm %s573_s15, 8  ;;  %s376_s13 = int_to_ptr.vmem [resolvable:$true] %s375_s13 }
  0x1c   : > { %v553_v13 = vpack.i.bf16 %v328_v10, %v318_v9  ;;  %v324_v29 = vperm.slane %v316_v27, 0  ;;  %v334_v30 = vperm.slane %v316_v27, 1  ;;  %v337_v35 = vld [vmem:[%s829_s4] sm:$0xff]  ;;  %p575_p12 = scmp.ne.s32.totalorder %s573_s15, %s574_s16  ;;  %s578_s27 = scalar_lea.hbm %s830_s5, 16 }
  0x1d   : > { %342 = vmatpush.msra.mxu0 %v310_v7  ;;  %p579_p1 = scmp.lt.s32.totalorder %s573_s15, %s830_s5  ;;  %p580_p2 = scmp.lt.s32.totalorder %s578_s27, %s574_s16 }
  0x1e   : > { %p576_p13 = pnand %p575_p12, %p711_p4 }
  0x1f   : > { %343 = vmatpush.msra.mxu0 %v309_v11  ;;  %p581_p3 = por %p580_p2, %p579_p1 }
  0x20   : > { %p577_p0 = pneg %p576_p13 }
  0x21   : > { %344 = vmatpush.msra.mxu0 %v308_v12  ;;  %554 = vperm.xlu0 %552, %v553_v13  }
  0x22   : > { %p582_p5 = pnand %p581_p3, %p577_p0 }
  0x23   : > { %345 = vmatpush.msra.mxu0 %v307_v14 }
  0x25   : > { %346 = vmatpush.msra.mxu0 %v306_v15 }
  0x27   : > { %347 = vmatpush.msra.mxu0 %v305_v16 }
  0x29   : > { %348 = vmatpush.msra.mxu0 %v304_v17 }
  0x2b   : > { %349 = vmatpush.msra.mxu0 %v303_v18 }
  0x2d   : > { %350 = vmatpush.msra.mxu0 %v302_v19 }
  0x2f   : > { %351 = vmatpush.msra.mxu0 %v301_v20 }
  0x31   : > { %352 = vmatpush.msra.mxu0 %v300_v21 }
  0x33   : > { %353 = vmatpush.msra.mxu0 %v299_v22 }
  0x8b   : > { %v295_v25 = vpop.permute.xlu0 %294 }
  0x8c   : > { %vm296_vm2 = vcmp.eq.s32.totalorder %v292_v24, %v295_v25 }
  0x8d   : > { %489 = vmatmul.msk.f32.vlgmr.msra.gmra.mxu0 %vm296_vm2, %v640_v26 }
  0x93   : > { %v555_v28 = vpop.permute.xlu0 %554 }
  0x94   : > { %v557_v31 = vunpack.i.h.bf16 %v555_v28  ;;  %v556_v32 = vunpack.i.l.bf16 %v555_v28 }
  0x96   : > { %v335_v33 = vmul.f32 %v557_v31, %v334_v30  ;;  %v325_v34 = vmul.f32 %v556_v32, %v324_v29 }
  0x98   : > { %v336_v37 = vadd.f32 %v335_v33, %v325_v34 }
 0x10a   : > { %v355_v36 = vpop.f32.mrf.mxu0 }
 0x10b   : > { %v356_v38 = vadd.f32 %v355_v36, %v337_v35 }
 0x10d   : > { %v358_v39 = vadd.f32 %v356_v38, %v336_v37 }
 0x10f   : > { %360 = vst.msk [vmem:[%s271_s12] sm:$0xff] %vm359_vm3, %v358_v39 }
 0x110   : > { %585 = shalt.err (!%p582_p5)
}
 0x111   : > { %494 = dma.vmem_to_hbm [thread:$0]  (%p711_p4), %s376_s13, 128, %s378_s14, %s362_s21  }
 0x112 PF: > { %p500_p6 = scmp.ge.s32.totalorder %s636_s23, 2  ;;  %s389_s25 = sand.u32 1, %s616_s18  }
 0x113   : > { %s390_s8 = scalar_lea.sflag [#allocation3], %s389_s25 }
 0x114   : > { %p497_p7 = pnand %p500_p6, %p718_p8 }
 0x116   : > { %p498_p9 = pneg %p497_p7 }
 0x118   : > { %611 = dma.done.wait (%p498_p9), %s390_s8, 128  }
 0x119   : > { %613 = vsyncadd (%p498_p9), %s390_s8, 4294967168  ;;  %s18_s23 = sadd.s32 1, %s636_s23   ;;  %s833_s18 = smov %s620_s19 }
 0x11a   : > { %p15_p10 = scmp.ge.s32.totalorder %s18_s23, 4   ;;  %s834_s19 = smov %s624_s20 }
 0x11b   : > { %s835_s20 = smov %s724_s6  ;;  %s836_s21 = smov %s632_s22 }
 0x11c   : > { %s837_s22 = smov %s839_s26  ;;  %17 = sbr.rel (!%p15_p10) target bundleno = 4 (0x4), region = 81 }
 0x121   :  { %396 = vsyncpa [#allocation3], 1 }
 0x122   :  { %398 = vsyncpa [#allocation3 + $0x1], 1 }

</bundles_post_ra>
